<compile_context>
chip_gen: v5e
topology: v5e:2x2
jax: 0.10.0
libtpu: 0.0.40
codegen_flags: <defaults>
</compile_context>

<pallas_src>
import functools

import jax
import jax.numpy as jnp
from jax.experimental import pallas as pl
from jax.experimental.pallas import tpu as pltpu


def _device_kind():
    try:
        return jax.devices()[0].device_kind.lower()
    except Exception:
        return ""


def _vmem_budgets():
    """(double-buffered input budget bytes, vmem_limit_bytes) per TPU generation."""
    kind = _device_kind()
    if "v7" in kind or "7x" in kind:
        return 24 << 20, 40 << 20   # 3.2 TB/s HBM: biggest tiles; respect 64 MiB physical VMEM
    if "v5" in kind:
        return 12 << 20, 32 << 20   # lowest HBM BW: ~6 MiB/buffer already amortizes 0.35 us/step
    return 20 << 20, 32 << 20       # v6e (and default)


def _bf16_exp_ok():
    kind = _device_kind()
    return ("v6" in kind) or ("v7" in kind) or ("7x" in kind)


def _sublane_multiple(itemsize):
    return {4: 8, 2: 16, 1: 32}.get(itemsize, 8)


def _pick_tile_n(n, c, itemsize, input_budget_bytes):
    """Batch tile from a VMEM byte budget (no hard row cap).

    Budget covers BOTH double-buffered inputs per pipeline buffer: the (tn, C) logits
    block plus the (tn, 1) int32 targets tile, which VMEM lane-pads to 128 lanes
    (512 B per row).
    """
    sub = _sublane_multiple(itemsize)
    if n <= sub:
        return n                                   # single full-extent block
    bytes_per_row = c * itemsize + 512             # logits row + lane-padded targets row
    tn = input_budget_bytes // (2 * bytes_per_row)  # 2 = double buffering
    tn = max(sub, min(int(tn), n))
    return max(sub, (tn // sub) * sub)             # sublane-aligned


def _ce_partial_sum_kernel(logits_ref, targets_ref, out_ref, acc_ref, *,
                           n_total, tile_n, tiles_per_core, exp_in_bf16):
    p = pl.program_id(0)          # parallel axis (megacore split on v7x)
    i = pl.program_id(1)          # serial reduction axis (per-core tile loop)

    @pl.when(i == 0)
    def _():
        acc_ref[...] = jnp.zeros_like(acc_ref)

    logits = logits_ref[...].astype(jnp.float32)          # (TN, C)
    targets = targets_ref[...]                            # (TN, 1) int32
    tn, c = logits.shape

    # --- per-row cross entropy with fused target gather (row_max cancels) ---
    row_max = jnp.max(logits, axis=-1, keepdims=True)                    # (TN, 1)
    shifted = logits - row_max                                           # (TN, C), <= 0
    if exp_in_bf16:
        # v6e/v7x only: bf16 EUP; shifted <= 0 so bf16 exp error is bounded, sum in f32.
        exp_s = jnp.exp(shifted.astype(jnp.bfloat16)).astype(jnp.float32)
    else:
        exp_s = jnp.exp(shifted)
    lse = jnp.log(jnp.sum(exp_s, axis=-1, keepdims=True))                # (TN, 1)

    col_ids = jax.lax.broadcasted_iota(jnp.int32, (1, c), 1)             # (1, C), broadcasts
    tgt_shifted = jnp.sum(jnp.where(col_ids == targets, shifted, 0.0),
                          axis=-1, keepdims=True)                        # (TN, 1)
    per_row_ce = lse - tgt_shifted                                       # (TN, 1)

    # Mask rows outside the batch (partial last tile / clamped duplicate tile).
    # Must remain a select: masked rows may hold inf/NaN after exp/log on garbage.
    tile_idx = p * tiles_per_core + i
    row_ids = tile_idx * tile_n + jax.lax.broadcasted_iota(jnp.int32, (tn, 1), 0)
    per_row_ce = jnp.where(row_ids < n_total, per_row_ce, 0.0)

    acc_ref[...] += jnp.sum(per_row_ce, axis=0, keepdims=True)           # (1, 1)

    @pl.when(i == tiles_per_core - 1)
    def _():
        out_ref[...] = acc_ref[...].reshape(1, 1, 1)


def focal_loss(inputs, targets, alpha=1.0, gamma=2.0, tile_n=None):
    """inputs: (N, C) float logits (f32 or bf16); targets: (N,) int class ids -> scalar f32."""
    n, c = inputs.shape
    targets_2d = targets.astype(jnp.int32).reshape(n, 1)
    itemsize = jnp.dtype(inputs.dtype).itemsize
    input_budget, vmem_limit = _vmem_budgets()

    if tile_n is None:
        tn = _pick_tile_n(n, c, itemsize, input_budget)
    else:
        sub = _sublane_multiple(itemsize)
        tn = int(tile_n)
        if tn != n:
            tn = max(sub, (min(tn, n) // sub) * sub)
    n_tiles = pl.cdiv(n, tn)

    # Split the batch across both TensorCores on v7x; harmless serial fallback on 1-TC chips.
    split = 2 if n_tiles >= 2 else 1
    tiles_per_core = pl.cdiv(n_tiles, split)

    exp_in_bf16 = bool(inputs.dtype == jnp.bfloat16) and _bf16_exp_ok()

    kernel = functools.partial(
        _ce_partial_sum_kernel,
        n_total=n, tile_n=tn, tiles_per_core=tiles_per_core,
        exp_in_bf16=exp_in_bf16)

    def in_map(p_, i_):
        # Clamp so an odd tile count never indexes past the array; the duplicate
        # tile's logical rows are >= n and get fully masked inside the kernel.
        t = p_ * tiles_per_core + i_
        return (jnp.minimum(t, n_tiles - 1), 0)

    partials = pl.pallas_call(
        kernel,
        out_shape=jax.ShapeDtypeStruct((split, 1, 1), jnp.float32),
        grid=(split, tiles_per_core),
        in_specs=[
            pl.BlockSpec((tn, c), in_map),   # logits batch tile
            pl.BlockSpec((tn, 1), in_map),   # matching targets tile
        ],
        out_specs=pl.BlockSpec((1, 1, 1), lambda p_, i_: (p_, 0, 0)),
        scratch_shapes=[pltpu.VMEM((1, 1), jnp.float32)],   # per-core CE-sum accumulator
        compiler_params=pltpu.CompilerParams(
            dimension_semantics=("parallel", "arbitrary"),
            vmem_limit_bytes=vmem_limit,
        ),
    )(inputs, targets_2d)

    # Tiny scalar finalize (mean CE -> focal) outside the kernel.
    ce = jnp.sum(partials[:, 0, 0]) * (1.0 / float(n))
    ce = jnp.maximum(ce, 0.0)                      # guard tiny negative rounding
    pt = jnp.exp(-ce)
    one_minus_pt = 1.0 - pt
    g_int = int(gamma)
    if float(g_int) == float(gamma) and 0 <= g_int <= 4:
        w = jnp.ones_like(one_minus_pt)
        for _ in range(g_int):                     # gamma=2 -> two muls, no pow lowering
            w = w * one_minus_pt
    else:
        w = one_minus_pt ** jnp.float32(gamma)
    return jnp.float32(alpha) * w * ce


def _focal_loss_ref(inputs, targets, alpha=1.0, gamma=2.0):
    """Pure-JAX reference matching torch semantics."""
    logp = jax.nn.log_softmax(inputs.astype(jnp.float32), axis=-1)
    per_sample = -jnp.take_along_axis(
        logp, targets[:, None].astype(jnp.int32), axis=-1)[:, 0]
    ce = jnp.mean(per_sample)
    pt = jnp.exp(-ce)
    return alpha * (1.0 - pt) ** gamma * ce


if __name__ == "__main__":
    key = jax.random.PRNGKey(0)
    k1, k2, k3, k4, k5, k6, k7, k8 = jax.random.split(key, 8)

    # Case 1: small batch, single tile, split=1.
    N1, C1 = 8, 32
    x1 = jax.random.normal(k1, (N1, C1), dtype=jnp.float32)
    t1 = jax.random.randint(k2, (N1,), 0, C1, dtype=jnp.int32)
    out1 = jax.block_until_ready(focal_loss(x1, t1, alpha=1.0, gamma=2.0))
    ref1 = _focal_loss_ref(x1, t1, alpha=1.0, gamma=2.0)
    assert jnp.allclose(out1, ref1, rtol=1e-5, atol=1e-5), (out1, ref1)

    # Case 2: batch not a multiple of the tile -> partial-tile masking, 2-way core split.
    N2, C2 = 12, 32
    x2 = jax.random.normal(k3, (N2, C2), dtype=jnp.float32)
    t2 = jax.random.randint(k4, (N2,), 0, C2, dtype=jnp.int32)
    out2 = jax.block_until_ready(focal_loss(x2, t2, alpha=0.75, gamma=2.0))
    ref2 = _focal_loss_ref(x2, t2, alpha=0.75, gamma=2.0)
    assert jnp.allclose(out2, ref2, rtol=1e-5, atol=1e-5), (out2, ref2)

    # Case 3: forced small tile -> odd tile count, clamped index map, multi-step accumulation.
    N3, C3 = 40, 32
    x3 = jax.random.normal(k5, (N3, C3), dtype=jnp.float32)
    t3 = jax.random.randint(k6, (N3,), 0, C3, dtype=jnp.int32)
    out3 = jax.block_until_ready(focal_loss(x3, t3, alpha=1.0, gamma=2.0, tile_n=8))
    ref3 = _focal_loss_ref(x3, t3, alpha=1.0, gamma=2.0)
    assert jnp.allclose(out3, ref3, rtol=1e-5, atol=1e-5), (out3, ref3)

    # Case 4: bf16 logits (bf16 exp path on v6e/v7x, f32 path elsewhere).
    N4, C4 = 16, 32
    x4 = jax.random.normal(k7, (N4, C4), dtype=jnp.float32).astype(jnp.bfloat16)
    t4 = jax.random.randint(k8, (N4,), 0, C4, dtype=jnp.int32)
    out4 = jax.block_until_ready(focal_loss(x4, t4, alpha=1.0, gamma=2.0))
    ref4 = _focal_loss_ref(x4, t4, alpha=1.0, gamma=2.0)
    assert jnp.allclose(out4, ref4, rtol=1e-2, atol=1e-3), (out4, ref4)

    print("KERNEL_OK")
</pallas_src>

<mosaic_0001>
module attributes {stable_mosaic.version = 11 : i64} {
  func.func @_ce_partial_sum_kernel(%arg0: i32, %arg1: i32, %arg2: memref<8x32xf32, #tpu.memory_space<vmem>>, %arg3: memref<8x1xi32, #tpu.memory_space<vmem>>, %arg4: memref<1x1x1xf32, #tpu.memory_space<vmem>>, %arg5: memref<1x1xf32, #tpu.memory_space<vmem>>) attributes {dimension_semantics = [#tpu.dimension_semantics<parallel>, #tpu.dimension_semantics<arbitrary>], iteration_bounds = array<i64: 1, 1>, scalar_prefetch = 0 : i64, scratch_operands = 1 : i64, tpu.core_type = #tpu.core_type<tc>, window_params = [{transform_indices = @transform_0, window_bounds = array<i64: 8, 32>}, {transform_indices = @transform_1, window_bounds = array<i64: 8, 1>}, {transform_indices = @transform_2, window_bounds = array<i64: 1, 1, 1>}]} {
    %c0_i32 = arith.constant 0 : i32
    %0 = arith.cmpi eq, %arg1, %c0_i32 : i32
    %1 = arith.extui %0 : i1 to i32
    %c0_i32_0 = arith.constant 0 : i32
    %2 = arith.cmpi ne, %1, %c0_i32_0 : i32
    scf.if %2 {
      %cst_16 = arith.constant 0.000000e+00 : f32
      %40 = vector.broadcast %cst_16 : f32 to vector<1x1xf32>
      %c0_17 = arith.constant 0 : index
      %c0_18 = arith.constant 0 : index
      %41 = vector.load %arg5[%c0_17, %c0_18] : memref<1x1xf32, #tpu.memory_space<vmem>>, vector<1x1xf32>
      tpu.vector_store %arg5[%c0_17, %c0_18], %40 {strides = array<i32>} : memref<1x1xf32, #tpu.memory_space<vmem>>, vector<1x1xf32>,
    } else {
    }
    %c0 = arith.constant 0 : index
    %c0_1 = arith.constant 0 : index
    %3 = vector.load %arg2[%c0, %c0_1] : memref<8x32xf32, #tpu.memory_space<vmem>>, vector<8x32xf32>
    %c0_2 = arith.constant 0 : index
    %c0_3 = arith.constant 0 : index
    %4 = vector.load %arg3[%c0_2, %c0_3] : memref<8x1xi32, #tpu.memory_space<vmem>>, vector<8x1xi32>
    %cst = arith.constant dense<0xFF800000> : vector<8xf32>
    %5 = vector.multi_reduction <maximumf>, %3, %cst [1] : vector<8x32xf32> to vector<8xf32>
    %6 = vector.shape_cast %5 : vector<8xf32> to vector<8x1xf32>
    %7 = vector.broadcast %6 : vector<8x1xf32> to vector<8x32xf32>
    %8 = arith.subf %3, %7 : vector<8x32xf32>
    %9 = math.exp %8 : vector<8x32xf32>
    %cst_4 = arith.constant dense<0.000000e+00> : vector<8xf32>
    %10 = vector.multi_reduction <add>, %9, %cst_4 [1] : vector<8x32xf32> to vector<8xf32>
    %11 = vector.shape_cast %10 : vector<8xf32> to vector<8x1xf32>
    %12 = math.log %11 : vector<8x1xf32>
    %13 = tpu.iota {dimensions = array<i32: 1>} : vector<1x32xi32>
    %14 = vector.broadcast %13 : vector<1x32xi32> to vector<8x32xi32>
    %15 = vector.broadcast %4 : vector<8x1xi32> to vector<8x32xi32>
    %16 = arith.cmpi eq, %14, %15 : vector<8x32xi32>
    %cst_5 = arith.constant 0.000000e+00 : f32
    %17 = vector.broadcast %cst_5 : f32 to vector<8x32xf32>
    %18 = arith.select %16, %8, %17 : vector<8x32xi1>, vector<8x32xf32>
    %cst_6 = arith.constant dense<0.000000e+00> : vector<8xf32>
    %19 = vector.multi_reduction <add>, %18, %cst_6 [1] : vector<8x32xf32> to vector<8xf32>
    %20 = vector.shape_cast %19 : vector<8xf32> to vector<8x1xf32>
    %21 = arith.subf %12, %20 : vector<8x1xf32>
    %c1_i32 = arith.constant 1 : i32
    %22 = arith.muli %arg0, %c1_i32 : i32
    %23 = arith.addi %22, %arg1 : i32
    %c8_i32 = arith.constant 8 : i32
    %24 = arith.muli %23, %c8_i32 : i32
    %25 = tpu.iota {dimensions = array<i32: 0>} : vector<8x1xi32>
    %26 = vector.broadcast %24 : i32 to vector<8x1xi32>
    %27 = arith.addi %26, %25 : vector<8x1xi32>
    %c8_i32_7 = arith.constant 8 : i32
    %28 = vector.broadcast %c8_i32_7 : i32 to vector<8x1xi32>
    %29 = arith.cmpi slt, %27, %28 : vector<8x1xi32>
    %cst_8 = arith.constant 0.000000e+00 : f32
    %30 = vector.broadcast %cst_8 : f32 to vector<8x1xf32>
    %31 = arith.select %29, %21, %30 : vector<8x1xi1>, vector<8x1xf32>
    %c0_9 = arith.constant 0 : index
    %c0_10 = arith.constant 0 : index
    %32 = vector.load %arg5[%c0_9, %c0_10] : memref<1x1xf32, #tpu.memory_space<vmem>>, vector<1x1xf32>
    %cst_11 = arith.constant dense<0.000000e+00> : vector<1xf32>
    %33 = vector.multi_reduction <add>, %31, %cst_11 [0] : vector<8x1xf32> to vector<1xf32>
    %34 = vector.shape_cast %33 : vector<1xf32> to vector<1x1xf32>
    %35 = arith.addf %32, %34 : vector<1x1xf32>
    %c0_12 = arith.constant 0 : index
    %c0_13 = arith.constant 0 : index
    %36 = vector.load %arg5[%c0_12, %c0_13] : memref<1x1xf32, #tpu.memory_space<vmem>>, vector<1x1xf32>
    tpu.vector_store %arg5[%c0_12, %c0_13], %35 {strides = array<i32>} : memref<1x1xf32, #tpu.memory_space<vmem>>, vector<1x1xf32>,
    %c0_i32_14 = arith.constant 0 : i32
    %37 = arith.cmpi eq, %arg1, %c0_i32_14 : i32
    %38 = arith.extui %37 : i1 to i32
    %c0_i32_15 = arith.constant 0 : i32
    %39 = arith.cmpi ne, %38, %c0_i32_15 : i32
    scf.if %39 {
      %c0_16 = arith.constant 0 : index
      %c0_17 = arith.constant 0 : index
      %40 = vector.load %arg5[%c0_16, %c0_17] : memref<1x1xf32, #tpu.memory_space<vmem>>, vector<1x1xf32>
      %41 = vector.shape_cast %40 : vector<1x1xf32> to vector<1x1x1xf32>
      %c0_18 = arith.constant 0 : index
      %c0_19 = arith.constant 0 : index
      %c0_20 = arith.constant 0 : index
      %42 = vector.load %arg4[%c0_18, %c0_19, %c0_20] : memref<1x1x1xf32, #tpu.memory_space<vmem>>, vector<1x1x1xf32>
      tpu.vector_store %arg4[%c0_18, %c0_19, %c0_20], %41 {strides = array<i32>} : memref<1x1x1xf32, #tpu.memory_space<vmem>>, vector<1x1x1xf32>,
    } else {
    }
    return
  }
  func.func @transform_0(%arg0: i32, %arg1: i32) -> (i32, i32) {
    %c1_i32 = arith.constant 1 : i32
    %0 = arith.muli %arg0, %c1_i32 : i32
    %1 = arith.addi %0, %arg1 : i32
    %c0_i32 = arith.constant 0 : i32
    %2 = arith.minsi %1, %c0_i32 : i32
    %c0_i32_0 = arith.constant 0 : i32
    %c0_i32_1 = arith.constant 0 : i32
    return %2, %c0_i32_0 : i32, i32
  }
  func.func @transform_1(%arg0: i32, %arg1: i32) -> (i32, i32) {
    %c1_i32 = arith.constant 1 : i32
    %0 = arith.muli %arg0, %c1_i32 : i32
    %1 = arith.addi %0, %arg1 : i32
    %c0_i32 = arith.constant 0 : i32
    %2 = arith.minsi %1, %c0_i32 : i32
    %c0_i32_0 = arith.constant 0 : i32
    %c0_i32_1 = arith.constant 0 : i32
    return %2, %c0_i32_0 : i32, i32
  }
  func.func @transform_2(%arg0: i32, %arg1: i32) -> (i32, i32, i32) {
    %c0_i32 = arith.constant 0 : i32
    %c0_i32_0 = arith.constant 0 : i32
    %c0_i32_1 = arith.constant 0 : i32
    return %arg0, %c0_i32, %c0_i32_0 : i32, i32, i32
  }
}

</mosaic_0001>

<bundles_post_ra>
// kernel: tpu_custom_call.1
= control target key start
LH: loop header
LB: loop body
LE: loop exit
PB: predicated region body
PF: predicated region fallthrough
CT: control target
= control target key end

     0   :  { %vm74_vm0 = vcmask 261120   ;;  %s215_s0 = inlined_call_operand.vmem [shape: f32[8,32], index: 0, kind: input, shape index: {}]   ;;  %s216_s1 = inlined_call_operand.vmem [shape: s32[8,1], index: 1, kind: input, shape index: {}]   ;;  %s217_s2 = inlined_call_operand.hbm [shape: f32[1,1,1], index: 2, kind: output, shape index: {}]  }
   0x1   :  { %v72_v0 = vld [vmem:[%s215_s0] sm:$0xff] }
   0x2   :  { %7 = vsyncpa [#allocation4], 0  ;;  %v75_v1 = vsel %vm74_vm0, %v72_v0, -inf  ;;  %v182_v2 = vmov 0   ;;  %v73_v3 = vld [vmem:[%s216_s1] sm:$0xff]  ;;  %v86_v9 = vlaneseq  ;;  %vm70_vm2 = vcmask 0  }
   0x3   :  { %151 = vset.pattern.permute.xlu0 %v182_v2  ;;  %v183_v14 = vmov 0.0   ;;  %s184_s0 = smov [#allocation3]   ;;  %s127_s15 = sshll.u32 %s217_s2, 4  ;;  %s128_s15 = int_to_ptr.hbm [resolvable:$true] %s127_s15 }
   0x4   :  { %76 = vmax.xlane.f32.xlu0 %v75_v1  ;;  %v87_v10 = vand.u32 127, %v86_v9  ;;  %71 = vst.msk [vmem:[#allocation2] sm:$0x1] %vm70_vm2, %v183_v14  ;;  %s125_s1 = sshll.u32 %s184_s0, 4  ;;  %s126_s1 = int_to_ptr.vmem [resolvable:$true] %s125_s1 }
   0xb   :  { %v105_v25 = vld [vmem:[#allocation2] sm:$0x1] }
  0x18   :  { %89 = vperm.xlu0 %151, %v73_v3  }
  0x77   :  { %v77_v4 = vpop.xlane.xlu0 %76 }
  0x78   :  { %v78_v5 = vsub.f32 %v72_v0, %v77_v4 }
  0x7a   :  { %v79_v6 = vmul.f32 1.442695, %v78_v5 }
  0x7c   :  { %152 = vpow2.f32 %v79_v6 }
  0x82   :  { %v153_v7 = vpop.eup %152 }
  0x83   :  { %v81_v8 = vsel %vm74_vm0, %v153_v7, 0.0 }
  0x84   :  { %82 = vadd.xlane.f32.xlu1 %v81_v8 }
  0x8a   :  { %v90_v11 = vpop.permute.xlu0 %89 }
  0x8b   :  { %vm91_vm1 = vcmp.eq.s32.totalorder %v87_v10, %v90_v11 }
  0x8c   :  { %v92_v12 = vsel %vm91_vm1, %v78_v5, 0.0 }
  0x8d   :  { %v93_v13 = vsel %vm74_vm0, %v92_v12, 0.0 }
  0x8e   :  { %94 = vadd.xlane.f32.xlu1 %v93_v13 }
  0xf7   :  { %v83_v15 = vpop.xlane.xlu1 %82 }
  0xf8   :  { %154 = vlog2.f32 %v83_v15 }
  0xfe   :  { %v155_v16 = vpop.eup %154 }
  0xff   :  { %v85_v17 = vmul.f32 0.6931472, %v155_v16 }
 0x101   :  { %v95_v18 = vpop.xlane.xlu1 %94 }
 0x102   :  { %v96_v19 = vsub.f32 %v85_v17, %v95_v18 }
 0x104   :  { %v106_v20 = vrot.slane %v96_v19, 4 }
 0x106   :  { %v107_v21 = vadd.f32 %v106_v20, %v96_v19 }
 0x108   :  { %v108_v22 = vrot.slane %v107_v21, 2 }
 0x10a   :  { %v109_v23 = vadd.f32 %v108_v22, %v107_v21 }
 0x10c   :  { %v110_v24 = vrot.slane %v109_v23, 1 }
 0x10e   :  { %v111_v26 = vadd.f32 %v110_v24, %v109_v23 }
 0x110   :  { %v112_v27 = vadd.f32 %v111_v26, %v105_v25 }
 0x112   :  { %114 = vst.msk [vmem:[#allocation2] sm:$0x1] %vm70_vm2, %v112_v27 }
 0x119   :  { %v118_v28 = vld [vmem:[#allocation2] sm:$0x1] }
 0x11a   :  { %119 = vst.msk [vmem:[#allocation3] sm:$0x1] %vm70_vm2, %v118_v28 }
 0x11b   :  { %130 = dma.vmem_to_hbm [thread:$0]  %s126_s1, 16, %s128_s15, [#allocation4]  }
 0x11c   :  { %180 = dma.done.wait [#allocation4], 16  }
 0x11d   :  { %181 = vsyncadd [#allocation4], 4294967280 }
 0x11e   :  { %135 = vsyncpa [#allocation4], 1 }

</bundles_post_ra>
